<compile_context>
chip_gen: v7x
topology: tpu7x:2x2x1
jax: 0.10.0
libtpu: 0.0.40
codegen_flags: <defaults>
</compile_context>

<pallas_src>
import jax
import jax.numpy as jnp
from jax import lax
from jax.experimental import pallas as pl
from jax.experimental.pallas import tpu as pltpu

H_DIM = 3
MAX_LENGTH = 6

_LANES = 128                       # TPU vreg lane width
_NFLIGHT = 4                       # max outstanding output DMAs
_TARGET_TILE_BYTES = 2 * 1024 * 1024   # ~2 MiB per output DMA


def _pos_enc_kernel(emb_hbm, out_hbm, rep_vmem, in_sem, out_sems):
    """Fan a VMEM-resident positional-embedding slab out to every batch row.

    emb_hbm : (R, 128)      HBM (pl.ANY)  -- lane-dense embedding slab
    out_hbm : (B, R, 128)   HBM (pl.ANY)  -- kernel output, written via DMA only
    rep_vmem: (TB, R, 128)  VMEM scratch  -- slab replicated TB times
    in_sem  : DMA semaphore               -- single HBM->VMEM fetch
    out_sems: (_NFLIGHT,) DMA semaphores  -- ring for VMEM->HBM writes
    """
    TB, R, L = rep_vmem.shape
    B = out_hbm.shape[0]
    groups = B // TB                       # wrapper guarantees TB divides B
    nflight = min(_NFLIGHT, groups)

    # 1) One HBM->VMEM fetch of the slab (input single-buffered by construction).
    fetch = pltpu.make_async_copy(emb_hbm, rep_vmem.at[0], in_sem)
    fetch.start()
    fetch.wait()

    # 2) Replicate across the TB staging rows (one-time cost, amortized over
    #    all groups).
    if TB > 1:
        def replicate(i, carry):
            rep_vmem[i] = rep_vmem[0]
            return carry
        lax.fori_loop(1, TB, replicate, 0)

    # 3) Stream the batch out as B // TB long, lane-dense VMEM->HBM DMAs with
    #    up to `nflight` in flight: no output VMEM buffers, no per-step
    #    pipeline fill/drain, pure HBM-write roofline.
    def issue(g, carry):
        slot = g % nflight

        @pl.when(g >= nflight)
        def _():
            # Retire the DMA that last used this semaphore slot.
            pltpu.make_async_copy(
                rep_vmem,
                out_hbm.at[pl.ds((g - nflight) * TB, TB)],
                out_sems.at[slot],
            ).wait()

        pltpu.make_async_copy(
            rep_vmem,
            out_hbm.at[pl.ds(g * TB, TB)],
            out_sems.at[slot],
        ).start()
        return carry

    lax.fori_loop(0, groups, issue, 0)

    # 4) Drain the in-flight tail.
    def drain(g, carry):
        slot = g % nflight
        pltpu.make_async_copy(
            rep_vmem,
            out_hbm.at[pl.ds(g * TB, TB)],
            out_sems.at[slot],
        ).wait()
        return carry

    lax.fori_loop(groups - nflight, groups, drain, 0)


def _choose_tb(batch, slab_bytes):
    """Largest divisor of `batch` whose staging buffer stays ~<= 2 MiB."""
    tb = 1
    for d in range(1, batch + 1):
        if batch % d == 0 and d * slab_bytes <= _TARGET_TILE_BYTES:
            tb = d
    return tb


def positional_encoding(x, emb_table):
    """x: (B, S) int tokens (values unused), emb_table: (max_length, H)
    -> (B, S, H) positional embeddings (matches the PyTorch forward)."""
    B, S = x.shape
    max_length, H = emb_table.shape
    assert S <= max_length, "sequence length exceeds max_length"  # trace-time
    dtype = emb_table.dtype
    itemsize = jnp.dtype(dtype).itemsize

    # Lane-dense slab: flatten the S rows actually used and pad to whole
    # 128-lane rows so every DMA is full-width (no masked partial stores).
    flat = emb_table[:S].reshape(S * H)
    padded = pl.cdiv(S * H, _LANES) * _LANES
    if padded != S * H:
        flat = jnp.pad(flat, (0, padded - S * H))
    R = padded // _LANES
    emb_slab = flat.reshape(R, _LANES)

    slab_bytes = R * _LANES * itemsize
    TB = _choose_tb(B, slab_bytes)          # batch rows per output DMA
    rep_bytes = TB * slab_bytes             # total VMEM held by the kernel

    out = pl.pallas_call(
        _pos_enc_kernel,
        out_shape=jax.ShapeDtypeStruct((B, R, _LANES), dtype),
        in_specs=[pl.BlockSpec(memory_space=pl.ANY)],    # raw HBM ref, manual DMA
        out_specs=pl.BlockSpec(memory_space=pl.ANY),     # output stays in HBM
        scratch_shapes=[
            pltpu.VMEM((TB, R, _LANES), dtype),          # single staging copy
            pltpu.SemaphoreType.DMA(()),                 # input fetch
            pltpu.SemaphoreType.DMA((_NFLIGHT,)),        # output DMA ring
        ],
        compiler_params=pltpu.CompilerParams(
            # Budget sized to the actual staging buffer (+headroom): fits v5e's
            # 16 MiB default and v7x's 32 MiB scoped / 64 MiB physical VMEM.
            vmem_limit_bytes=int(max(rep_bytes + (2 << 20), 8 << 20)),
        ),
        cost_estimate=pl.CostEstimate(
            flops=0,
            transcendentals=0,
            bytes_accessed=int(slab_bytes + B * slab_bytes),
        ),
    )(emb_slab)

    # Wrapper-side layout plumbing: drop lane padding, restore (B, S, H).
    return out.reshape(B, R * _LANES)[:, : S * H].reshape(B, S, H)


if __name__ == "__main__":
    key = jax.random.PRNGKey(0)
    k_emb, k_x = jax.random.split(key)

    # Deterministic parameter init: nn.Embedding default is N(0, 1).
    emb_table = jax.random.normal(k_emb, (MAX_LENGTH, H_DIM), dtype=jnp.float32)

    # Small input consistent with the forward: (batch=2, seq=4) integer tokens.
    B, S = 2, 4
    x = jax.random.randint(k_x, (B, S), 0, MAX_LENGTH, dtype=jnp.int32)

    out = jax.block_until_ready(positional_encoding(x, emb_table))

    # Pure-JAX reference check (same semantics as the PyTorch forward).
    positions = jnp.broadcast_to(jnp.arange(S, dtype=jnp.int32)[None, :], (B, S))
    ref = jnp.take(emb_table, positions, axis=0)
    assert out.shape == (B, S, H_DIM)
    assert jnp.array_equal(out, ref)

    print("KERNEL_OK")
</pallas_src>

<mosaic_0001>
module attributes {stable_mosaic.version = 11 : i64} {
  func.func @_pos_enc_kernel(%arg0: memref<1x128xf32, #tpu.memory_space<any>>, %arg1: memref<2x1x128xf32, #tpu.memory_space<any>>, %arg2: memref<2x1x128xf32, #tpu.memory_space<vmem>>, %arg3: memref<!tpu.dma_semaphore, #tpu.memory_space<semaphore_mem>>, %arg4: memref<4x!tpu.dma_semaphore, #tpu.memory_space<semaphore_mem>>) attributes {dimension_semantics = [], scalar_prefetch = 0 : i64, scratch_operands = 3 : i64, tpu.core_type = #tpu.core_type<tc>} {
    %c0_i32 = arith.constant 0 : i32
    %c0_i32_0 = arith.constant 0 : i32
    %c0_i32_1 = arith.constant 0 : i32
    %0 = tpu.memref_slice %arg2[%c0_i32, %c0_i32_0, %c0_i32_1] : memref<2x1x128xf32, #tpu.memory_space<vmem>> -> memref<1x1x128xf32, #tpu.memory_space<vmem>>
    %1 = tpu.memref_squeeze %0 : memref<1x1x128xf32, #tpu.memory_space<vmem>> -> memref<1x128xf32, #tpu.memory_space<vmem>>
    tpu.enqueue_dma source(%arg0 : memref<1x128xf32, #tpu.memory_space<any>>) target(%1 : memref<1x128xf32, #tpu.memory_space<vmem>>) target_semaphore(%arg3 : memref<!tpu.dma_semaphore, #tpu.memory_space<semaphore_mem>>)
    %c0_i32_2 = arith.constant 0 : i32
    %c0_i32_3 = arith.constant 0 : i32
    %c0_i32_4 = arith.constant 0 : i32
    %2 = tpu.memref_slice %arg2[%c0_i32_2, %c0_i32_3, %c0_i32_4] : memref<2x1x128xf32, #tpu.memory_space<vmem>> -> memref<1x1x128xf32, #tpu.memory_space<vmem>>
    %3 = tpu.memref_squeeze %2 : memref<1x1x128xf32, #tpu.memory_space<vmem>> -> memref<1x128xf32, #tpu.memory_space<vmem>>
    tpu.wait_dma2 semaphore(%arg3 : memref<!tpu.dma_semaphore, #tpu.memory_space<semaphore_mem>>) src(%arg0 : memref<1x128xf32, #tpu.memory_space<any>>) dst(%3 : memref<1x128xf32, #tpu.memory_space<vmem>>)
    %c1_i32 = arith.constant 1 : i32
    %c0 = arith.constant 0 : index
    %c0_5 = arith.constant 0 : index
    %c0_6 = arith.constant 0 : index
    %4 = vector.load %arg2[%c0, %c0_5, %c0_6] : memref<2x1x128xf32, #tpu.memory_space<vmem>>, vector<1x1x128xf32>
    %5 = vector.shape_cast %4 : vector<1x1x128xf32> to vector<1x128xf32>
    %6 = arith.index_cast %c1_i32 : i32 to index
    %c0_7 = arith.constant 0 : index
    %c0_8 = arith.constant 0 : index
    %7 = vector.load %arg2[%6, %c0_7, %c0_8] : memref<2x1x128xf32, #tpu.memory_space<vmem>>, vector<1x1x128xf32>
    %8 = vector.shape_cast %7 : vector<1x1x128xf32> to vector<1x128xf32>
    %9 = vector.shape_cast %5 : vector<1x128xf32> to vector<1x1x128xf32>
    tpu.vector_store %arg2[%6, %c0_7, %c0_8], %9 {strides = array<i32>} : memref<2x1x128xf32, #tpu.memory_space<vmem>>, vector<1x1x128xf32>,
    %c1_i32_9 = arith.constant 1 : i32
    %c0_i32_10 = arith.constant 0 : i32
    %c1_i32_11 = arith.constant 1 : i32
    %c0_i32_12 = arith.constant 0 : i32
    %10 = arith.cmpi eq, %c1_i32_11, %c0_i32_12 : i32
    %c1_i32_13 = arith.constant 1 : i32
    %11 = arith.select %10, %c1_i32_13, %c1_i32_11 : i32
    %12 = arith.remsi %c0_i32_10, %11 : i32
    %c0_i32_14 = arith.constant 0 : i32
    %13 = arith.cmpi ne, %12, %c0_i32_14 : i32
    %c0_i32_15 = arith.constant 0 : i32
    %14 = arith.cmpi slt, %12, %c0_i32_15 : i32
    %c0_i32_16 = arith.constant 0 : i32
    %15 = arith.cmpi slt, %11, %c0_i32_16 : i32
    %16 = arith.xori %14, %15 : i1
    %17 = arith.andi %16, %13 : i1
    %18 = arith.addi %12, %11 : i32
    %19 = arith.select %17, %18, %12 : i32
    %c1_i32_17 = arith.constant 1 : i32
    %20 = arith.cmpi sge, %c0_i32_10, %c1_i32_17 : i32
    %21 = arith.extui %20 : i1 to i32
    %c0_i32_18 = arith.constant 0 : i32
    %22 = arith.cmpi ne, %21, %c0_i32_18 : i32
    scf.if %22 {
      %c1_i32_33 = arith.constant 1 : i32
      %41 = arith.subi %c0_i32_10, %c1_i32_33 : i32
      %c2_i32_34 = arith.constant 2 : i32
      %42 = arith.muli %41, %c2_i32_34 : i32
      %c0_i32_35 = arith.constant 0 : i32
      %c0_i32_36 = arith.constant 0 : i32
      %43 = tpu.memref_slice %arg1[%42, %c0_i32_35, %c0_i32_36] : memref<2x1x128xf32, #tpu.memory_space<any>> -> memref<2x1x128xf32, #tpu.memory_space<any>>
      %44 = tpu.memref_slice %arg4[%19] : memref<4x!tpu.dma_semaphore, #tpu.memory_space<semaphore_mem>> -> memref<1x!tpu.dma_semaphore, #tpu.memory_space<semaphore_mem>>
      %45 = tpu.memref_squeeze %44 : memref<1x!tpu.dma_semaphore, #tpu.memory_space<semaphore_mem>> -> memref<!tpu.dma_semaphore, #tpu.memory_space<semaphore_mem>>
      tpu.wait_dma2 semaphore(%45 : memref<!tpu.dma_semaphore, #tpu.memory_space<semaphore_mem>>) src(%arg2 : memref<2x1x128xf32, #tpu.memory_space<vmem>>) dst(%43 : memref<2x1x128xf32, #tpu.memory_space<any>>)
    } else {
    }
    %c2_i32 = arith.constant 2 : i32
    %23 = arith.muli %c0_i32_10, %c2_i32 : i32
    %c0_i32_19 = arith.constant 0 : i32
    %c0_i32_20 = arith.constant 0 : i32
    %24 = tpu.memref_slice %arg1[%23, %c0_i32_19, %c0_i32_20] : memref<2x1x128xf32, #tpu.memory_space<any>> -> memref<2x1x128xf32, #tpu.memory_space<any>>
    %25 = tpu.memref_slice %arg4[%19] : memref<4x!tpu.dma_semaphore, #tpu.memory_space<semaphore_mem>> -> memref<1x!tpu.dma_semaphore, #tpu.memory_space<semaphore_mem>>
    %26 = tpu.memref_squeeze %25 : memref<1x!tpu.dma_semaphore, #tpu.memory_space<semaphore_mem>> -> memref<!tpu.dma_semaphore, #tpu.memory_space<semaphore_mem>>
    tpu.enqueue_dma source(%arg2 : memref<2x1x128xf32, #tpu.memory_space<vmem>>) target(%24 : memref<2x1x128xf32, #tpu.memory_space<any>>) target_semaphore(%26 : memref<!tpu.dma_semaphore, #tpu.memory_space<semaphore_mem>>)
    %c1_i32_21 = arith.constant 1 : i32
    %c0_i32_22 = arith.constant 0 : i32
    %c1_i32_23 = arith.constant 1 : i32
    %c0_i32_24 = arith.constant 0 : i32
    %27 = arith.cmpi eq, %c1_i32_23, %c0_i32_24 : i32
    %c1_i32_25 = arith.constant 1 : i32
    %28 = arith.select %27, %c1_i32_25, %c1_i32_23 : i32
    %29 = arith.remsi %c0_i32_22, %28 : i32
    %c0_i32_26 = arith.constant 0 : i32
    %30 = arith.cmpi ne, %29, %c0_i32_26 : i32
    %c0_i32_27 = arith.constant 0 : i32
    %31 = arith.cmpi slt, %29, %c0_i32_27 : i32
    %c0_i32_28 = arith.constant 0 : i32
    %32 = arith.cmpi slt, %28, %c0_i32_28 : i32
    %33 = arith.xori %31, %32 : i1
    %34 = arith.andi %33, %30 : i1
    %35 = arith.addi %29, %28 : i32
    %36 = arith.select %34, %35, %29 : i32
    %c2_i32_29 = arith.constant 2 : i32
    %37 = arith.muli %c0_i32_22, %c2_i32_29 : i32
    %c0_i32_30 = arith.constant 0 : i32
    %c0_i32_31 = arith.constant 0 : i32
    %38 = tpu.memref_slice %arg1[%37, %c0_i32_30, %c0_i32_31] : memref<2x1x128xf32, #tpu.memory_space<any>> -> memref<2x1x128xf32, #tpu.memory_space<any>>
    %39 = tpu.memref_slice %arg4[%36] : memref<4x!tpu.dma_semaphore, #tpu.memory_space<semaphore_mem>> -> memref<1x!tpu.dma_semaphore, #tpu.memory_space<semaphore_mem>>
    %40 = tpu.memref_squeeze %39 : memref<1x!tpu.dma_semaphore, #tpu.memory_space<semaphore_mem>> -> memref<!tpu.dma_semaphore, #tpu.memory_space<semaphore_mem>>
    tpu.wait_dma2 semaphore(%40 : memref<!tpu.dma_semaphore, #tpu.memory_space<semaphore_mem>>) src(%arg2 : memref<2x1x128xf32, #tpu.memory_space<vmem>>) dst(%38 : memref<2x1x128xf32, #tpu.memory_space<any>>)
    %c1_i32_32 = arith.constant 1 : i32
    return
  }
}

</mosaic_0001>

<bundles_post_ra>
// kernel: tpu_custom_call.1
= control target key start
LH: loop header
LB: loop body
LE: loop exit
PB: predicated region body
PF: predicated region fallthrough
CT: control target
= control target key end

     0   :  { %s125_s6 = smov [#allocation2]   ;;  %s170_s0 = inlined_call_operand.hbm [shape: f32[1,128], index: 0, kind: input, shape index: {}]   ;;  %s171_s1 = inlined_call_operand.hbm [shape: f32[2,1,128], index: 1, kind: output, shape index: {}]  }
   0x1   :  { %s13_s7 = sshll.u32 %s125_s6, 4  ;;  %s77_s10 = scalar_lea.hbm %s170_s0, 16  ;;  %s136_s7 = int_to_ptr.vmem [resolvable:$true] %s13_s7 }
   0x2   :  { %p78_p0 = scmp.ne.s32.totalorder %s170_s0, %s77_s10  ;;  %p81_p1 = scmp.lt.u32.totalorder %s77_s10, %s170_s0 }
   0x4   :  { %p83_p2 = pnand %p81_p1, %p78_p0 }
   0x6   :  { %86 = shalt.err (!%p83_p2)  }
   0x7   :  { %s87_s15 = scalar_lea.vmem %s136_s7, 16  ;;  %s91_s16 = scalar_lea.vmem %s136_s7, 32 }
   0x8   :  { %p88_p3 = scmp.ne.s32.totalorder %s136_s7, %s87_s15  ;;  %p92_p4 = scmp.lt.s32.totalorder %s136_s7, %s136_s7 }
   0x9   :  { %p93_p5 = scmp.lt.s32.totalorder %s91_s16, %s87_s15 }
   0xb   :  { %p94_p6 = por %p93_p5, %p92_p4 }
   0xd   :  { %p95_p7 = pnand %p94_p6, %p88_p3 }
   0xf   :  { %98 = shalt.err (!%p95_p7)  }
  0x10   :  { %16 = dma.hbm_to_vmem [thread:$0]  %s170_s0, 16, %s136_s7, [#allocation3] }
  0x11   :  { %121 = dma.done.wait [#allocation3], 16 }
  0x12   :  { %122 = vsyncadd [#allocation3], 4294967280  ;;  %v20_v0 = vld [vmem:[#allocation2] sm:$0x1]  ;;  %p100_p8 = scmp.ne.s32.totalorder %s136_s7, %s91_s16  ;;  %p105_p9 = scmp.lt.s32.totalorder %s91_s16, %s91_s16 }
  0x13   :  { %22 = vst [vmem:[#allocation2 + $0x1] sm:$0x1] %v20_v0 }
  0x14   :  { %p106_p10 = por %p105_p9, %p92_p4 }
  0x16   :  { %p107_p11 = pnand %p106_p10, %p100_p8 }
  0x18   :  { %110 = shalt.err (!%p107_p11)  }
  0x19   :  { %s111_s21 = scalar_lea.hbm %s171_s1, 32 }
  0x1a   :  { %p112_p12 = scmp.ne.s32.totalorder %s171_s1, %s111_s21  ;;  %p115_p13 = scmp.lt.u32.totalorder %s111_s21, %s171_s1 }
  0x1c   :  { %p117_p0 = pnand %p115_p13, %p112_p12 }
  0x1e   :  { %120 = shalt.err (!%p117_p0)  }
  0x1f   :  { %33 = dma.vmem_to_hbm [thread:$0]  %s136_s7, 32, %s171_s1, [#allocation4] }
  0x20   :  { %123 = dma.done.wait [#allocation4], 32 }
  0x21   :  { %124 = vsyncadd [#allocation4], 4294967264 }
  0x22   :  { %38 = vsyncmov [#allocation3] }
  0x25   :  { %s39_s27 = vpop.sfrf %38 }
  0x26   :  { %p71_p1 = scmp.ne.s32.totalorder %s39_s27, 0 }
  0x28   :  { %43 = shalt.err (%p71_p1)  }
  0x29   :  { %44 = vsyncmov [#allocation4] }
  0x2c   :  { %s45_s28 = vpop.sfrf %44 }
  0x2d   :  { %p72_p2 = scmp.ne.s32.totalorder %s45_s28, 0 }
  0x2f   :  { %49 = shalt.err (%p72_p2)  }
  0x30   :  { %51 = vsyncmov [#allocation4 + $0x1] }
  0x33   :  { %s52_s29 = vpop.sfrf %51 }
  0x34   :  { %p73_p3 = scmp.ne.s32.totalorder %s52_s29, 0 }
  0x36   :  { %56 = shalt.err (%p73_p3)  }
  0x37   :  { %58 = vsyncmov [#allocation4 + $0x2] }
  0x3a   :  { %s59_s30 = vpop.sfrf %58 }
  0x3b   :  { %p74_p4 = scmp.ne.s32.totalorder %s59_s30, 0 }
  0x3d   :  { %63 = shalt.err (%p74_p4)  }
  0x3e   :  { %65 = vsyncmov [#allocation4 + $0x3] }
  0x41   :  { %s66_s1 = vpop.sfrf %65 }
  0x42   :  { %p75_p5 = scmp.ne.s32.totalorder %s66_s1, 0 }
  0x44   :  { %70 = shalt.err (%p75_p5)  }

</bundles_post_ra>
